<compile_context>
chip_gen: v6e
topology: v6e:2x2x1
jax: 0.10.0
libtpu: 0.0.40
codegen_flags: <defaults>
</compile_context>

<pallas_src>
import jax
import jax.numpy as jnp
from jax.experimental import pallas as pl
from jax.experimental.pallas import tpu as pltpu

IN_FEATURES = 32 * 32 * 3   # 3072
OUT_FEATURES = 100
N_PAD = 128                 # lane-padded output width


def _linear_kernel(x_ref, w_ref, b_ref, o_ref):
    """y = x @ W_t + b for one (tm, N_PAD) output tile; full K in one block.

    x_ref: (tm, K)     f32
    w_ref: (K, N_PAD)  f32  (pre-transposed, zero-padded columns 100..127)
    b_ref: (1, N_PAD)  f32
    o_ref: (tm, N_PAD) f32
    """
    y = jnp.dot(x_ref[...], w_ref[...], preferred_element_type=jnp.float32)
    o_ref[...] = (y + b_ref[...]).astype(o_ref.dtype)


def prepare_params(weight, bias):
    """Convert PyTorch-layout params to the kernel layout (done once).

    weight: (N, K) -> (K, N_PAD) transposed, columns N..N_PAD-1 zeroed
    bias:   (N,)   -> (1, N_PAD) zero-padded
    """
    n, k = weight.shape
    w_t = jnp.zeros((k, N_PAD), weight.dtype).at[:, :n].set(weight.T)
    b_p = jnp.zeros((1, N_PAD), bias.dtype).at[0, :n].set(bias)
    return w_t, b_p


def _choose_tile_m(m, tm_max=512):
    """Single full-M block for small batches; otherwise 256-aligned tiles
    capped at tm_max, chosen so the grid has >= 2 steps (v7x megacore)."""
    if m <= 256:
        return m
    half = (m + 1) // 2
    tm = ((half + 255) // 256) * 256
    return min(tm_max, tm)


def pallas_linear(x2d, w_t, b_p):
    """y = x2d @ w_t + b_p (padded), returns (M, OUT_FEATURES).

    x2d: (M, K) float32
    w_t: (K, N_PAD) float32  (from prepare_params)
    b_p: (1, N_PAD) float32
    """
    m, k = x2d.shape
    kw, np_ = w_t.shape
    assert k == kw and np_ == N_PAD

    tm = _choose_tile_m(m)
    grid = (pl.cdiv(m, tm),)

    cost = pl.CostEstimate(
        flops=2 * m * k * N_PAD,
        transcendentals=0,
        bytes_accessed=4 * (m * k + k * N_PAD + N_PAD + m * N_PAD),
    )

    out = pl.pallas_call(
        _linear_kernel,
        out_shape=jax.ShapeDtypeStruct((m, N_PAD), jnp.float32),
        grid_spec=pltpu.PrefetchScalarGridSpec(
            num_scalar_prefetch=0,
            grid=grid,
            in_specs=[
                pl.BlockSpec((tm, k), lambda i: (i, 0)),       # x rows, full K
                pl.BlockSpec((k, N_PAD), lambda i: (0, 0)),    # full weight (3072,128)
                pl.BlockSpec((1, N_PAD), lambda i: (0, 0)),    # full bias
            ],
            out_specs=pl.BlockSpec((tm, N_PAD), lambda i: (i, 0)),
        ),
        compiler_params=pltpu.CompilerParams(
            dimension_semantics=("parallel",),
            vmem_limit_bytes=32 << 20,
        ),
        cost_estimate=cost,
    )(x2d, w_t, b_p)

    # Drop the zero-padded output columns (tiny copy, outside the kernel).
    return out[:, :OUT_FEATURES]


def densenet_forward(x_nchw, w_t, b_p):
    """DenseNet.forward: x.view(-1, 3072) @ W^T + b (params pre-prepared)."""
    x2d = x_nchw.reshape(-1, IN_FEATURES)  # row-major over (C, H, W), like .view
    return pallas_linear(x2d, w_t, b_p)


def init_params(key):
    """Deterministic init matching nn.Linear(3072, 100) parameter shapes."""
    kw, kb = jax.random.split(key)
    bound = 1.0 / jnp.sqrt(float(IN_FEATURES))  # PyTorch default uniform bound
    weight = jax.random.uniform(
        kw, (OUT_FEATURES, IN_FEATURES), jnp.float32, -bound, bound
    )
    bias = jax.random.uniform(kb, (OUT_FEATURES,), jnp.float32, -bound, bound)
    return weight, bias


if __name__ == "__main__":
    key = jax.random.PRNGKey(0)
    k_x, k_p, k_big = jax.random.split(key, 3)

    weight, bias = init_params(k_p)           # PyTorch layout (100, 3072), (100,)
    w_t, b_p = prepare_params(weight, bias)   # kernel layout (3072, 128), (1, 128)

    # Small CIFAR-shaped NCHW batch (single full-M block path).
    x = jax.random.normal(k_x, (2, 3, 32, 32), jnp.float32)
    y = jax.block_until_ready(densenet_forward(x, w_t, b_p))
    y_ref = x.reshape(-1, IN_FEATURES) @ weight.T + bias
    assert y.shape == (2, OUT_FEATURES)
    assert jnp.allclose(y, y_ref, atol=1e-4, rtol=1e-4)

    # Larger, non-divisible batch to exercise the tiled-M path
    # (tm=256, grid=(2,), masked boundary block — no host-side padding).
    x_big = jax.random.normal(k_big, (300, 3, 32, 32), jnp.float32)
    y_big = jax.block_until_ready(densenet_forward(x_big, w_t, b_p))
    y_big_ref = x_big.reshape(-1, IN_FEATURES) @ weight.T + bias
    assert y_big.shape == (300, OUT_FEATURES)
    assert jnp.allclose(y_big, y_big_ref, atol=1e-4, rtol=1e-4)

    print("KERNEL_OK")
</pallas_src>

<mosaic_0001>
module attributes {stable_mosaic.version = 11 : i64} {
  func.func @_linear_kernel(%arg0: i32, %arg1: memref<2x3072xf32, #tpu.memory_space<vmem>>, %arg2: memref<3072x128xf32, #tpu.memory_space<vmem>>, %arg3: memref<1x128xf32, #tpu.memory_space<vmem>>, %arg4: memref<2x128xf32, #tpu.memory_space<vmem>>) attributes {dimension_semantics = [#tpu.dimension_semantics<parallel>], iteration_bounds = array<i64: 1>, scalar_prefetch = 0 : i64, scratch_operands = 0 : i64, tpu.core_type = #tpu.core_type<tc>, window_params = [{transform_indices = @transform_0, window_bounds = array<i64: 2, 3072>}, {pipeline_mode = #tpu.pipeline_mode<synchronous>, transform_indices = @transform_1, window_bounds = array<i64: 3072, 128>}, {pipeline_mode = #tpu.pipeline_mode<synchronous>, transform_indices = @transform_2, window_bounds = array<i64: 1, 128>}, {transform_indices = @transform_3, window_bounds = array<i64: 2, 128>}]} {
    %c0 = arith.constant 0 : index
    %c0_0 = arith.constant 0 : index
    %0 = vector.load %arg1[%c0, %c0_0] : memref<2x3072xf32, #tpu.memory_space<vmem>>, vector<2x3072xf32>
    %c0_1 = arith.constant 0 : index
    %c0_2 = arith.constant 0 : index
    %1 = vector.load %arg2[%c0_1, %c0_2] : memref<3072x128xf32, #tpu.memory_space<vmem>>, vector<3072x128xf32>
    %cst = arith.constant dense<0.000000e+00> : vector<2x128xf32>
    %2 = tpu.matmul %0, %1, %cst {dimension_numbers = #tpu.dot_dimension_numbers<[1], [0], [0], [1], [0, 0, 1, 1], [], []>} : vector<2x3072xf32>, vector<3072x128xf32>, vector<2x128xf32> -> vector<2x128xf32>
    %c0_3 = arith.constant 0 : index
    %c0_4 = arith.constant 0 : index
    %3 = vector.load %arg3[%c0_3, %c0_4] : memref<1x128xf32, #tpu.memory_space<vmem>>, vector<1x128xf32>
    %4 = vector.broadcast %3 : vector<1x128xf32> to vector<2x128xf32>
    %5 = arith.addf %2, %4 : vector<2x128xf32>
    %c0_5 = arith.constant 0 : index
    %c0_6 = arith.constant 0 : index
    %6 = vector.load %arg4[%c0_5, %c0_6] : memref<2x128xf32, #tpu.memory_space<vmem>>, vector<2x128xf32>
    tpu.vector_store %arg4[%c0_5, %c0_6], %5 {strides = array<i32>} : memref<2x128xf32, #tpu.memory_space<vmem>>, vector<2x128xf32>,
    return
  }
  func.func @transform_0(%arg0: i32) -> (i32, i32) {
    %c0_i32 = arith.constant 0 : i32
    %c0_i32_0 = arith.constant 0 : i32
    return %arg0, %c0_i32 : i32, i32
  }
  func.func @transform_1(%arg0: i32) -> (i32, i32) {
    %c0_i32 = arith.constant 0 : i32
    %c0_i32_0 = arith.constant 0 : i32
    %c0_i32_1 = arith.constant 0 : i32
    return %c0_i32, %c0_i32_0 : i32, i32
  }
  func.func @transform_2(%arg0: i32) -> (i32, i32) {
    %c0_i32 = arith.constant 0 : i32
    %c0_i32_0 = arith.constant 0 : i32
    %c0_i32_1 = arith.constant 0 : i32
    return %c0_i32, %c0_i32_0 : i32, i32
  }
  func.func @transform_3(%arg0: i32) -> (i32, i32) {
    %c0_i32 = arith.constant 0 : i32
    %c0_i32_0 = arith.constant 0 : i32
    return %arg0, %c0_i32 : i32, i32
  }
}

</mosaic_0001>

<bundles_post_ra>
// kernel: tpu_custom_call.1
= control target key start
LH: loop header
LB: loop body
LE: loop exit
PB: predicated region body
PF: predicated region fallthrough
CT: control target
= control target key end

     0   :  { %8 = vsyncpa [#allocation3], 0  ;;  %s2011_s0 = inlined_call_operand.hbm [shape: f32[2,3072], index: 0, kind: input, shape index: {}]   ;;  %s2012_s1 = inlined_call_operand.hbm [shape: f32[3072,128], index: 1, kind: input, shape index: {}]   ;;  %s2013_s2 = inlined_call_operand.hbm [shape: f32[1,128], index: 2, kind: input, shape index: {}]   ;;  %s2014_s3 = inlined_call_operand.hbm [shape: f32[2,128], index: 3, kind: output, shape index: {}]  }
   0x1   :  { %9 = vsyncpa [#allocation6], 0 }
   0x2   :  { %10 = vsyncpa [#allocation4], 0  ;;  %s1958_s12 = smov [#allocation5]  }
   0x3   :  { %s26_s13 = sshll.u32 %s1958_s12, 4  ;;  %s27_s13 = int_to_ptr.vmem [resolvable:$true] %s26_s13 }
   0x4   :  { %s1880_s14 = scalar_lea.vmem %s27_s13, 49152  ;;  %p1885_p1 = scmp.lt.s32.totalorder %s27_s13, %s27_s13 }
   0x5   :  { %p1881_p0 = scmp.ne.s32.totalorder %s27_s13, %s1880_s14  ;;  %p1886_p2 = scmp.lt.s32.totalorder %s1880_s14, %s1880_s14 }
   0x7   :  { %p1887_p3 = por %p1886_p2, %p1885_p1 }
   0x9   :  { %p1888_p4 = pnand %p1887_p3, %p1881_p0 }
   0xb   :  { %1891 = shalt.err (!%p1888_p4)
}
   0xc   :  { %s1959_s15 = smov 128   ;;  %s1960_s16 = smov 8  }
   0xd   :  { %32 = dma.hbm_to_vmem [thread:$0]  %s2012_s1, 49152, %s27_s13, [#allocation6], %s1959_s15, %s1959_s15, %s1960_s16  }
   0xe   :  { %s1961_s19 = smov [#allocation2]   ;;  %s1962_s21 = smov [#allocation7]  }
   0xf   :  { %s17_s20 = sshll.u32 %s1961_s19, 4  ;;  %s39_s22 = sshll.u32 %s1962_s21, 4  ;;  %s18_s20 = int_to_ptr.vmem [resolvable:$true] %s17_s20  ;;  %s40_s22 = int_to_ptr.vmem [resolvable:$true] %s39_s22 }
  0x10   :  { %s1900_s23 = scalar_lea.vmem %s18_s20, 768  ;;  %p1905_p6 = scmp.lt.s32.totalorder %s18_s20, %s18_s20 }
  0x11   :  { %p1901_p5 = scmp.ne.s32.totalorder %s18_s20, %s1900_s23  ;;  %p1906_p7 = scmp.lt.s32.totalorder %s1900_s23, %s1900_s23 }
  0x13   :  { %p1907_p8 = por %p1906_p7, %p1905_p6 }
  0x15   :  { %p1908_p9 = pnand %p1907_p8, %p1901_p5 }
  0x17   :  { %1911 = shalt.err (!%p1908_p9)
}
  0x18   :  { %20 = dma.hbm_to_vmem [thread:$0]  %s2011_s0, 768, %s18_s20, [#allocation3]  }
  0x19   :  { %s1920_s26 = scalar_lea.vmem %s40_s22, 16  ;;  %s1924_s1 = scalar_lea.vmem %s40_s22, 32 }
  0x1a   :  { %p1921_p10 = scmp.ne.s32.totalorder %s40_s22, %s1920_s26  ;;  %p1925_p11 = scmp.lt.s32.totalorder %s40_s22, %s40_s22 }
  0x1b   :  { %p1926_p12 = scmp.lt.s32.totalorder %s1924_s1, %s1920_s26 }
  0x1d   :  { %p1927_p13 = por %p1926_p12, %p1925_p11 }
  0x1f   :  { %p1928_p0 = pnand %p1927_p13, %p1921_p10 }
  0x21   :  { %1931 = shalt.err (!%p1928_p0)
}
  0x22   :  { %42 = dma.hbm_to_vmem [thread:$0]  %s2013_s2, 16, %s40_s22, [#allocation6]  }
  0x23   :  { %1952 = dma.done.wait [#allocation3], 768  }
  0x24   :  { %1953 = vsyncadd [#allocation3], 4294966528 }
  0x25   :  { %1954 = dma.done.wait [#allocation6], 49168  }
  0x26   :  { %1955 = vsyncadd [#allocation6], 4294918128  ;;  %v89_v0 = vld [vmem:[#allocation5 + $0xf8] sm:$0xff]  ;;  %v88_v4 = vld [vmem:[#allocation5 + $0xf0] sm:$0xff]  ;;  %v1963_v30 = vmov 1983009808   ;;  %v459_v32 = vlaneseq }
  0x27   :  { %v121_v1 = vld [vmem:[#allocation5 + $0x1f8] sm:$0xff]  ;;  %1439 = vmatprep.subr.mxu0 %v89_v0  ;;  %v120_v5 = vld [vmem:[#allocation5 + $0x1f0] sm:$0xff]  ;;  %v87_v8 = vld [vmem:[#allocation5 + $0xe8] sm:$0xff]  ;;  %v457_v31 = vunpack.c.l.s4 %v1963_v30  ;;  %s1964_s0 = smov [#allocation8]  }
  0x28   :  { %v73_v2 = vld [vmem:[#allocation5 + $0x78] sm:$0xff]  ;;  %1474 = vmatprep.subr.mxu1 %v121_v1  ;;  %v72_v6 = vld [vmem:[#allocation5 + $0x70] sm:$0xff]  ;;  %v119_v9 = vld [vmem:[#allocation5 + $0x1e8] sm:$0xff]  ;;  %v460_v42 = vshrl.u32 %v459_v32, 7  ;;  %s1428_s2 = sshll.u32 %s1964_s0, 4  ;;  %s1429_s2 = int_to_ptr.vmem [resolvable:$true] %s1428_s2 }
  0x29   :  { %v105_v3 = vld [vmem:[#allocation5 + $0x178] sm:$0xff]  ;;  %1440 = vmatpush3.msra.mxu0 %v73_v2  ;;  %v104_v7 = vld [vmem:[#allocation5 + $0x170] sm:$0xff]  ;;  %v71_v10 = vld [vmem:[#allocation5 + $0x68] sm:$0xff]  ;;  %v458_v41 = vunpack.c.0.s8 %v457_v31  ;;  %s1932_s29 = scalar_lea.vmem %s1429_s2, 32  ;;  %p1937_p2 = scmp.lt.s32.totalorder %s1429_s2, %s1429_s2 }
  0x2a   :  { %1475 = vmatpush3.msra.mxu1 %v105_v3  ;;  %1441 = vmatprep.subr.mxu0 %v88_v4  ;;  %v103_v11 = vld [vmem:[#allocation5 + $0x168] sm:$0xff]  ;;  %v86_v12 = vld [vmem:[#allocation5 + $0xe0] sm:$0xff]  ;;  %v85_v16 = vld [vmem:[#allocation5 + $0xd8] sm:$0xff]  ;;  %p1933_p1 = scmp.ne.s32.totalorder %s1429_s2, %s1932_s29  ;;  %p1938_p3 = scmp.lt.s32.totalorder %s1932_s29, %s1932_s29 }
  0x2b   :  { %1476 = vmatprep.subr.mxu1 %v120_v5  ;;  %1442 = vmatpush3.msra.mxu0 %v72_v6  ;;  %v118_v13 = vld [vmem:[#allocation5 + $0x1e0] sm:$0xff]  ;;  %v117_v17 = vld [vmem:[#allocation5 + $0x1d8] sm:$0xff]  ;;  %v84_v20 = vld [vmem:[#allocation5 + $0xd0] sm:$0xff]  ;;  %v1994_v51 = vsub.s32 %v458_v41, %v460_v42 }
  0x2c   :  { %1477 = vmatpush3.msra.mxu1 %v104_v7  ;;  %1443 = vmatprep.subr.mxu0 %v87_v8  ;;  %v70_v14 = vld [vmem:[#allocation5 + $0x60] sm:$0xff]  ;;  %v69_v18 = vld [vmem:[#allocation5 + $0x58] sm:$0xff]  ;;  %v116_v21 = vld [vmem:[#allocation5 + $0x1d0] sm:$0xff]  ;;  %p1939_p4 = por %p1938_p3, %p1937_p2 }
  0x2d   :  { %1478 = vmatprep.subr.mxu1 %v119_v9  ;;  %v102_v15 = vld [vmem:[#allocation5 + $0x160] sm:$0xff]  ;;  %1444 = vmatpush3.msra.mxu0 %v71_v10  ;;  %v101_v19 = vld [vmem:[#allocation5 + $0x158] sm:$0xff]  ;;  %v68_v22 = vld [vmem:[#allocation5 + $0x50] sm:$0xff] }
  0x2e   :  { %1479 = vmatpush3.msra.mxu1 %v103_v11  ;;  %1445 = vmatprep.subr.mxu0 %v86_v12  ;;  %v100_v23 = vld [vmem:[#allocation5 + $0x150] sm:$0xff]  ;;  %v83_v24 = vld [vmem:[#allocation5 + $0xc8] sm:$0xff]  ;;  %v82_v28 = vld [vmem:[#allocation5 + $0xc0] sm:$0xff]  ;;  %p1940_p5 = pnand %p1939_p4, %p1933_p1 }
  0x2f   :  { %1480 = vmatprep.subr.mxu1 %v118_v13  ;;  %1446 = vmatpush3.msra.mxu0 %v70_v14  ;;  %v115_v25 = vld [vmem:[#allocation5 + $0x1c8] sm:$0xff]  ;;  %v114_v29 = vld [vmem:[#allocation5 + $0x1c0] sm:$0xff]  ;;  %v81_v35 = vld [vmem:[#allocation5 + $0xb8] sm:$0xff] }
  0x30   :  { %1481 = vmatpush3.msra.mxu1 %v102_v15  ;;  %1447 = vmatprep.subr.mxu0 %v85_v16  ;;  %v67_v26 = vld [vmem:[#allocation5 + $0x48] sm:$0xff]  ;;  %v66_v33 = vld [vmem:[#allocation5 + $0x40] sm:$0xff]  ;;  %v113_v36 = vld [vmem:[#allocation5 + $0x1b8] sm:$0xff] }
  0x31   :  { %1482 = vmatprep.subr.mxu1 %v117_v17  ;;  %1448 = vmatpush3.msra.mxu0 %v69_v18  ;;  %v99_v27 = vld [vmem:[#allocation5 + $0x148] sm:$0xff]  ;;  %v98_v34 = vld [vmem:[#allocation5 + $0x140] sm:$0xff]  ;;  %v65_v37 = vld [vmem:[#allocation5 + $0x38] sm:$0xff] }
  0x32   :  { %1483 = vmatpush3.msra.mxu1 %v101_v19  ;;  %1449 = vmatprep.subr.mxu0 %v84_v20  ;;  %v97_v38 = vld [vmem:[#allocation5 + $0x138] sm:$0xff]  ;;  %v80_v39 = vld [vmem:[#allocation5 + $0xb0] sm:$0xff]  ;;  %v79_v45 = vld [vmem:[#allocation5 + $0xa8] sm:$0xff] }
  0x33   :  { %1484 = vmatprep.subr.mxu1 %v116_v21  ;;  %1450 = vmatpush3.msra.mxu0 %v68_v22  ;;  %v112_v40 = vld [vmem:[#allocation5 + $0x1b0] sm:$0xff]  ;;  %v111_v46 = vld [vmem:[#allocation5 + $0x1a8] sm:$0xff]  ;;  %v78_v49 = vld [vmem:[#allocation5 + $0xa0] sm:$0xff] }
  0x34   :  { %1485 = vmatpush3.msra.mxu1 %v100_v23  ;;  %1451 = vmatprep.subr.mxu0 %v83_v24  ;;  %v64_v43 = vld [vmem:[#allocation5 + $0x30] sm:$0xff]  ;;  %v63_v47 = vld [vmem:[#allocation5 + $0x28] sm:$0xff]  ;;  %v110_v50 = vld [vmem:[#allocation5 + $0x1a0] sm:$0xff] }
  0x35   :  { %1486 = vmatprep.subr.mxu1 %v115_v25  ;;  %1452 = vmatpush3.msra.mxu0 %v67_v26  ;;  %v96_v44 = vld [vmem:[#allocation5 + $0x130] sm:$0xff]  ;;  %v95_v48 = vld [vmem:[#allocation5 + $0x128] sm:$0xff]  ;;  %v62_v52 = vld [vmem:[#allocation5 + $0x20] sm:$0xff] }
  0x36   :  { %1487 = vmatpush3.msra.mxu1 %v99_v27  ;;  %1453 = vmatprep.subr.mxu0 %v82_v28  ;;  %v94_v53 = vld [vmem:[#allocation5 + $0x120] sm:$0xff]  ;;  %v52_v54 = vld [vmem:[#allocation2] sm:$0xff]  ;;  %v77_v55 = vld [vmem:[#allocation5 + $0x98] sm:$0xff] }
  0x37   :  { %1488 = vmatprep.subr.mxu1 %v114_v29  ;;  %1454 = vmatpush3.msra.mxu0 %v66_v33  ;;  %v109_v56 = vld [vmem:[#allocation5 + $0x198] sm:$0xff]  ;;  %v455_v57 = vcombine.high %v52_v54, %v52_v54  ;;  %v76_v60 = vld [vmem:[#allocation5 + $0x90] sm:$0xff]  ;;  %v462_v62 = vrot.slane %v52_v54, %v1994_v51  ;;  %v75_v1 = vld [vmem:[#allocation5 + $0x88] sm:$0xff] }
  0x38   :  { %1489 = vmatpush3.msra.mxu1 %v98_v34  ;;  %1455 = vmatprep.subr.mxu0 %v81_v35  ;;  %v61_v58 = vld [vmem:[#allocation5 + $0x18] sm:$0xff]  ;;  %v108_v61 = vld [vmem:[#allocation5 + $0x190] sm:$0xff]  ;;  %v107_v2 = vld [vmem:[#allocation5 + $0x188] sm:$0xff] }
  0x39   :  { %1490 = vmatprep.subr.mxu1 %v113_v36  ;;  %1456 = vmatpush3.msra.mxu0 %v65_v37  ;;  %v93_v59 = vld [vmem:[#allocation5 + $0x118] sm:$0xff]  ;;  %v60_v63 = vld [vmem:[#allocation5 + $0x10] sm:$0xff]  ;;  %v469_v3 = vrot.slane %v455_v57, %v1994_v51  ;;  %v59_v4 = vld [vmem:[#allocation5 + $0x8] sm:$0xff]  ;;  %v470_v8 = vcombine.high %v462_v62, %v462_v62 }
  0x3a   :  { %1491 = vmatpush3.msra.mxu1 %v97_v38  ;;  %1457 = vmatprep.subr.mxu0 %v80_v39  ;;  %v92_v0 = vld [vmem:[#allocation5 + $0x110] sm:$0xff]  ;;  %v91_v5 = vld [vmem:[#allocation5 + $0x108] sm:$0xff]  ;;  %v74_v6 = vld [vmem:[#allocation5 + $0x80] sm:$0xff] }
  0x3b   :  { %1492 = vmatprep.subr.mxu1 %v112_v40  ;;  %1458 = vmatpush3.msra.mxu0 %v64_v43  ;;  %v106_v7 = vld [vmem:[#allocation5 + $0x180] sm:$0xff]  ;;  %v471_v11 = vcombine.high %v469_v3, %v469_v3  ;;  %v153_v12 = vld [vmem:[#allocation5 + $0x2f8] sm:$0xff]  ;;  %v152_v16 = vld [vmem:[#allocation5 + $0x2f0] sm:$0xff] }
  0x3c   :  { %1493 = vmatpush3.msra.mxu1 %v96_v44  ;;  %1459 = vmatprep.subr.mxu0 %v79_v45  ;;  %v58_v9 = vld [vmem:[#allocation5] sm:$0xff]  ;;  %v185_v13 = vld [vmem:[#allocation5 + $0x3f8] sm:$0xff]  ;;  %v184_v17 = vld [vmem:[#allocation5 + $0x3f0] sm:$0xff] }
  0x3d   :  { %1494 = vmatprep.subr.mxu1 %v111_v46  ;;  %1460 = vmatpush3.msra.mxu0 %v63_v47  ;;  %v90_v10 = vld [vmem:[#allocation5 + $0x100] sm:$0xff]  ;;  %v137_v14 = vld [vmem:[#allocation5 + $0x278] sm:$0xff]  ;;  %v136_v18 = vld [vmem:[#allocation5 + $0x270] sm:$0xff] }
  0x3e   :  { %1495 = vmatpush3.msra.mxu1 %v95_v48  ;;  %1461 = vmatprep.subr.mxu0 %v78_v49  ;;  %v169_v15 = vld [vmem:[#allocation5 + $0x378] sm:$0xff]  ;;  %v168_v19 = vld [vmem:[#allocation5 + $0x370] sm:$0xff]  ;;  %v151_v20 = vld [vmem:[#allocation5 + $0x2e8] sm:$0xff] }
  0x3f   :  { %1496 = vmatprep.subr.mxu1 %v110_v50  ;;  %1462 = vmatpush3.msra.mxu0 %v62_v52  ;;  %v183_v21 = vld [vmem:[#allocation5 + $0x3e8] sm:$0xff]  ;;  %v150_v24 = vld [vmem:[#allocation5 + $0x2e0] sm:$0xff]  ;;  %v149_v28 = vld [vmem:[#allocation5 + $0x2d8] sm:$0xff] }
  0x40   :  { %1497 = vmatpush3.msra.mxu1 %v94_v53  ;;  %1463 = vmatprep.subr.mxu0 %v77_v55  ;;  %v135_v22 = vld [vmem:[#allocation5 + $0x268] sm:$0xff]  ;;  %v182_v25 = vld [vmem:[#allocation5 + $0x3e0] sm:$0xff]  ;;  %v181_v29 = vld [vmem:[#allocation5 + $0x3d8] sm:$0xff] }
  0x41   :  { %1498 = vmatprep.subr.mxu1 %v109_v56  ;;  %1464 = vmatpush3.msra.mxu0 %v61_v58  ;;  %v167_v23 = vld [vmem:[#allocation5 + $0x368] sm:$0xff]  ;;  %v134_v26 = vld [vmem:[#allocation5 + $0x260] sm:$0xff]  ;;  %v133_v30 = vld [vmem:[#allocation5 + $0x258] sm:$0xff] }
  0x42   :  { %1499 = vmatpush3.msra.mxu1 %v93_v59  ;;  %1465 = vmatprep.subr.mxu0 %v76_v60  ;;  %v166_v27 = vld [vmem:[#allocation5 + $0x360] sm:$0xff]  ;;  %v165_v31 = vld [vmem:[#allocation5 + $0x358] sm:$0xff]  ;;  %v148_v32 = vld [vmem:[#allocation5 + $0x2d0] sm:$0xff] }
  0x43   :  { %1500 = vmatprep.subr.mxu1 %v108_v61  ;;  %1466 = vmatpush3.msra.mxu0 %v60_v63  ;;  %v180_v33 = vld [vmem:[#allocation5 + $0x3d0] sm:$0xff]  ;;  %v147_v36 = vld [vmem:[#allocation5 + $0x2c8] sm:$0xff]  ;;  %v146_v40 = vld [vmem:[#allocation5 + $0x2c0] sm:$0xff] }
  0x44   :  { %1501 = vmatpush3.msra.mxu1 %v92_v0  ;;  %1467 = vmatprep.subr.mxu0 %v75_v1  ;;  %v132_v34 = vld [vmem:[#allocation5 + $0x250] sm:$0xff]  ;;  %v179_v37 = vld [vmem:[#allocation5 + $0x3c8] sm:$0xff]  ;;  %v178_v41 = vld [vmem:[#allocation5 + $0x3c0] sm:$0xff] }
  0x45   :  { %1502 = vmatprep.subr.mxu1 %v107_v2  ;;  %1468 = vmatpush3.msra.mxu0 %v59_v4  ;;  %v164_v35 = vld [vmem:[#allocation5 + $0x350] sm:$0xff]  ;;  %v131_v38 = vld [vmem:[#allocation5 + $0x248] sm:$0xff]  ;;  %v130_v42 = vld [vmem:[#allocation5 + $0x240] sm:$0xff] }
  0x46   :  { %1503 = vmatpush3.msra.mxu1 %v91_v5  ;;  %1469 = vmatprep.subr.mxu0 %v74_v6  ;;  %v163_v39 = vld [vmem:[#allocation5 + $0x348] sm:$0xff]  ;;  %v162_v43 = vld [vmem:[#allocation5 + $0x340] sm:$0xff]  ;;  %v145_v44 = vld [vmem:[#allocation5 + $0x2b8] sm:$0xff] }
  0x47   :  { %1504 = vmatprep.subr.mxu1 %v106_v7  ;;  %1470 = vmatpush3.msra.mxu0 %v58_v9  ;;  %v177_v45 = vld [vmem:[#allocation5 + $0x3b8] sm:$0xff]  ;;  %v144_v48 = vld [vmem:[#allocation5 + $0x2b0] sm:$0xff]  ;;  %v143_v53 = vld [vmem:[#allocation5 + $0x2a8] sm:$0xff] }
  0x48   :  { %645 = vmatprep.mubr.f32.mxu0 %v470_v8  ;;  %1505 = vmatpush3.msra.mxu1 %v90_v10  ;;  %v129_v46 = vld [vmem:[#allocation5 + $0x238] sm:$0xff]  ;;  %v176_v49 = vld [vmem:[#allocation5 + $0x3b0] sm:$0xff]  ;;  %v175_v54 = vld [vmem:[#allocation5 + $0x3a8] sm:$0xff] }
  0x49   :  { %646 = vmatmul.mubr.f32.vlgmr.msra.gmra.mxu0 %v462_v62  ;;  %715 = vmatprep.mubr.f32.mxu1 %v471_v11  ;;  %v161_v47 = vld [vmem:[#allocation5 + $0x338] sm:$0xff]  ;;  %v128_v50 = vld [vmem:[#allocation5 + $0x230] sm:$0xff]  ;;  %v127_v55 = vld [vmem:[#allocation5 + $0x228] sm:$0xff] }
  0x4a   :  { %1509 = vmatprep.subr.mxu0 %v153_v12  ;;  %1544 = vmatprep.subr.mxu1 %v185_v13  ;;  %v160_v52 = vld [vmem:[#allocation5 + $0x330] sm:$0xff]  ;;  %v159_v56 = vld [vmem:[#allocation5 + $0x328] sm:$0xff]  ;;  %v53_v57 = vld [vmem:[#allocation2 + $0x8] sm:$0xff] }
  0x4b   :  { %716 = vmatmul.mubr.f32.vlgmr.msra.gmra.mxu1 %v469_v3  ;;  %1510 = vmatpush3.msra.mxu0 %v137_v14  ;;  %v142_v58 = vld [vmem:[#allocation5 + $0x2a0] sm:$0xff]  ;;  %v141_v62 = vld [vmem:[#allocation5 + $0x298] sm:$0xff]  ;;  %v472_v0 = vcombine.high %v53_v57, %v53_v57  ;;  %v140_v3 = vld [vmem:[#allocation5 + $0x290] sm:$0xff]  ;;  %v479_v5 = vrot.slane %v53_v57, %v1994_v51 }
  0x4c   :  { %1545 = vmatpush3.msra.mxu1 %v169_v15  ;;  %1511 = vmatprep.subr.mxu0 %v152_v16  ;;  %v174_v59 = vld [vmem:[#allocation5 + $0x3a0] sm:$0xff]  ;;  %v173_v63 = vld [vmem:[#allocation5 + $0x398] sm:$0xff]  ;;  %v172_v4 = vld [vmem:[#allocation5 + $0x390] sm:$0xff] }
  0x4d   :  { %1546 = vmatprep.subr.mxu1 %v184_v17  ;;  %1512 = vmatpush3.msra.mxu0 %v136_v18  ;;  %v126_v60 = vld [vmem:[#allocation5 + $0x220] sm:$0xff]  ;;  %v125_v1 = vld [vmem:[#allocation5 + $0x218] sm:$0xff]  ;;  %v124_v6 = vld [vmem:[#allocation5 + $0x210] sm:$0xff]  ;;  %v486_v10 = vrot.slane %v472_v0, %v1994_v51  ;;  %v487_v15 = vcombine.high %v479_v5, %v479_v5 }
  0x4e   :  { %1547 = vmatpush3.msra.mxu1 %v168_v19  ;;  %1513 = vmatprep.subr.mxu0 %v151_v20  ;;  %v158_v61 = vld [vmem:[#allocation5 + $0x320] sm:$0xff]  ;;  %v157_v2 = vld [vmem:[#allocation5 + $0x318] sm:$0xff]  ;;  %v156_v7 = vld [vmem:[#allocation5 + $0x310] sm:$0xff] }
  0x4f   :  { %1548 = vmatprep.subr.mxu1 %v183_v21  ;;  %1514 = vmatpush3.msra.mxu0 %v135_v22  ;;  %v139_v8 = vld [vmem:[#allocation5 + $0x288] sm:$0xff]  ;;  %v138_v13 = vld [vmem:[#allocation5 + $0x280] sm:$0xff]  ;;  %v488_v18 = vcombine.high %v486_v10, %v486_v10  ;;  %v217_v19 = vld [vmem:[#allocation5 + $0x4f8] sm:$0xff] }
  0x50   :  { %1549 = vmatpush3.msra.mxu1 %v167_v23  ;;  %1515 = vmatprep.subr.mxu0 %v150_v24  ;;  %v171_v9 = vld [vmem:[#allocation5 + $0x388] sm:$0xff]  ;;  %v170_v14 = vld [vmem:[#allocation5 + $0x380] sm:$0xff]  ;;  %v249_v20 = vld [vmem:[#allocation5 + $0x5f8] sm:$0xff] }
  0x51   :  { %1550 = vmatprep.subr.mxu1 %v182_v25  ;;  %1516 = vmatpush3.msra.mxu0 %v134_v26  ;;  %v123_v11 = vld [vmem:[#allocation5 + $0x208] sm:$0xff]  ;;  %v122_v16 = vld [vmem:[#allocation5 + $0x200] sm:$0xff]  ;;  %v201_v21 = vld [vmem:[#allocation5 + $0x478] sm:$0xff] }
  0x52   :  { %1551 = vmatpush3.msra.mxu1 %v166_v27  ;;  %1517 = vmatprep.subr.mxu0 %v149_v28  ;;  %v155_v12 = vld [vmem:[#allocation5 + $0x308] sm:$0xff]  ;;  %v154_v17 = vld [vmem:[#allocation5 + $0x300] sm:$0xff]  ;;  %v233_v22 = vld [vmem:[#allocation5 + $0x578] sm:$0xff] }
  0x53   :  { %1552 = vmatprep.subr.mxu1 %v181_v29  ;;  %1518 = vmatpush3.msra.mxu0 %v133_v30  ;;  %v216_v23 = vld [vmem:[#allocation5 + $0x4f0] sm:$0xff]  ;;  %v215_v27 = vld [vmem:[#allocation5 + $0x4e8] sm:$0xff]  ;;  %v54_v0 = vld [vmem:[#allocation2 + $0x10] sm:$0xff] }
  0x54   :  { %1553 = vmatpush3.msra.mxu1 %v165_v31  ;;  %1519 = vmatprep.subr.mxu0 %v148_v32  ;;  %v248_v24 = vld [vmem:[#allocation5 + $0x5f0] sm:$0xff]  ;;  %v247_v28 = vld [vmem:[#allocation5 + $0x5e8] sm:$0xff]  ;;  %v214_v31 = vld [vmem:[#allocation5 + $0x4e0] sm:$0xff] }
  0x55   :  { %1554 = vmatprep.subr.mxu1 %v180_v33  ;;  %1520 = vmatpush3.msra.mxu0 %v132_v34  ;;  %v200_v25 = vld [vmem:[#allocation5 + $0x470] sm:$0xff]  ;;  %v199_v29 = vld [vmem:[#allocation5 + $0x468] sm:$0xff]  ;;  %v246_v32 = vld [vmem:[#allocation5 + $0x5e0] sm:$0xff] }
  0x56   :  { %1555 = vmatpush3.msra.mxu1 %v164_v35  ;;  %1521 = vmatprep.subr.mxu0 %v147_v36  ;;  %v232_v26 = vld [vmem:[#allocation5 + $0x570] sm:$0xff]  ;;  %v231_v30 = vld [vmem:[#allocation5 + $0x568] sm:$0xff]  ;;  %v198_v33 = vld [vmem:[#allocation5 + $0x460] sm:$0xff] }
  0x57   :  { %1556 = vmatprep.subr.mxu1 %v179_v37  ;;  %1522 = vmatpush3.msra.mxu0 %v131_v38  ;;  %v230_v34 = vld [vmem:[#allocation5 + $0x560] sm:$0xff]  ;;  %v213_v35 = vld [vmem:[#allocation5 + $0x4d8] sm:$0xff]  ;;  %v240_v57 = vld [vmem:[#allocation5 + $0x5b0] sm:$0xff] }
  0x58   :  { %1557 = vmatpush3.msra.mxu1 %v163_v39  ;;  %1523 = vmatprep.subr.mxu0 %v146_v40  ;;  %v245_v36 = vld [vmem:[#allocation5 + $0x5d8] sm:$0xff]  ;;  %v212_v39 = vld [vmem:[#allocation5 + $0x4d0] sm:$0xff] }
  0x59   :  { %1558 = vmatprep.subr.mxu1 %v178_v41  ;;  %1524 = vmatpush3.msra.mxu0 %v130_v42  ;;  %v197_v37 = vld [vmem:[#allocation5 + $0x458] sm:$0xff]  ;;  %v244_v40 = vld [vmem:[#allocation5 + $0x5d0] sm:$0xff] }
  0x5a   :  { %1559 = vmatpush3.msra.mxu1 %v162_v43  ;;  %1525 = vmatprep.subr.mxu0 %v145_v44  ;;  %v229_v38 = vld [vmem:[#allocation5 + $0x558] sm:$0xff]  ;;  %v196_v41 = vld [vmem:[#allocation5 + $0x450] sm:$0xff]  ;;  %v211_v43 = vld [vmem:[#allocation5 + $0x4c8] sm:$0xff] }
  0x5b   :  { %1560 = vmatprep.subr.mxu1 %v177_v45  ;;  %1526 = vmatpush3.msra.mxu0 %v129_v46  ;;  %v228_v42 = vld [vmem:[#allocation5 + $0x550] sm:$0xff]  ;;  %v243_v44 = vld [vmem:[#allocation5 + $0x5c8] sm:$0xff] }
  0x5c   :  { %1561 = vmatpush3.msra.mxu1 %v161_v47  ;;  %1527 = vmatprep.subr.mxu0 %v144_v48  ;;  %v195_v45 = vld [vmem:[#allocation5 + $0x448] sm:$0xff]  ;;  %v210_v47 = vld [vmem:[#allocation5 + $0x4c0] sm:$0xff] }
  0x5d   :  { %1562 = vmatprep.subr.mxu1 %v176_v49  ;;  %1528 = vmatpush3.msra.mxu0 %v128_v50  ;;  %v227_v46 = vld [vmem:[#allocation5 + $0x548] sm:$0xff]  ;;  %v242_v48 = vld [vmem:[#allocation5 + $0x5c0] sm:$0xff] }
  0x5e   :  { %1563 = vmatpush3.msra.mxu1 %v160_v52  ;;  %1529 = vmatprep.subr.mxu0 %v143_v53  ;;  %v194_v49 = vld [vmem:[#allocation5 + $0x440] sm:$0xff]  ;;  %v209_v52 = vld [vmem:[#allocation5 + $0x4b8] sm:$0xff] }
  0x5f   :  { %1564 = vmatprep.subr.mxu1 %v175_v54  ;;  %1530 = vmatpush3.msra.mxu0 %v127_v55  ;;  %v226_v50 = vld [vmem:[#allocation5 + $0x540] sm:$0xff]  ;;  %v241_v53 = vld [vmem:[#allocation5 + $0x5b8] sm:$0xff] }
  0x60   :  { %1565 = vmatpush3.msra.mxu1 %v159_v56  ;;  %1531 = vmatprep.subr.mxu0 %v142_v58  ;;  %v193_v54 = vld [vmem:[#allocation5 + $0x438] sm:$0xff]  ;;  %v208_v56 = vld [vmem:[#allocation5 + $0x4b0] sm:$0xff] }
  0x61   :  { %1566 = vmatprep.subr.mxu1 %v174_v59  ;;  %1532 = vmatpush3.msra.mxu0 %v126_v60  ;;  %v225_v55 = vld [vmem:[#allocation5 + $0x538] sm:$0xff]  ;;  %v192_v58 = vld [vmem:[#allocation5 + $0x430] sm:$0xff]  ;;  %v207_v60 = vld [vmem:[#allocation5 + $0x4a8] sm:$0xff] }
  0x62   :  { %1567 = vmatpush3.msra.mxu1 %v158_v61  ;;  %1533 = vmatprep.subr.mxu0 %v141_v62  ;;  %v224_v59 = vld [vmem:[#allocation5 + $0x530] sm:$0xff]  ;;  %v239_v61 = vld [vmem:[#allocation5 + $0x5a8] sm:$0xff] }
  0x63   :  { %1568 = vmatprep.subr.mxu1 %v173_v63  ;;  %1534 = vmatpush3.msra.mxu0 %v125_v1  ;;  %v191_v62 = vld [vmem:[#allocation5 + $0x428] sm:$0xff]  ;;  %v206_v1 = vld [vmem:[#allocation5 + $0x4a0] sm:$0xff] }
  0x64   :  { %1569 = vmatpush3.msra.mxu1 %v157_v2  ;;  %1535 = vmatprep.subr.mxu0 %v140_v3  ;;  %v223_v63 = vld [vmem:[#allocation5 + $0x528] sm:$0xff]  ;;  %v238_v2 = vld [vmem:[#allocation5 + $0x5a0] sm:$0xff] }
  0x65   :  { %1570 = vmatprep.subr.mxu1 %v172_v4  ;;  %1536 = vmatpush3.msra.mxu0 %v124_v6  ;;  %v190_v3 = vld [vmem:[#allocation5 + $0x420] sm:$0xff]  ;;  %v237_v6 = vld [vmem:[#allocation5 + $0x598] sm:$0xff] }
  0x66   :  { %1571 = vmatpush3.msra.mxu1 %v156_v7  ;;  %1537 = vmatprep.subr.mxu0 %v139_v8  ;;  %v222_v4 = vld [vmem:[#allocation5 + $0x520] sm:$0xff]  ;;  %v489_v7 = vcombine.high %v54_v0, %v54_v0  ;;  %v189_v8 = vld [vmem:[#allocation5 + $0x418] sm:$0xff] }
  0x67   :  { %1572 = vmatprep.subr.mxu1 %v171_v9  ;;  %1538 = vmatpush3.msra.mxu0 %v123_v11  ;;  %v221_v9 = vld [vmem:[#allocation5 + $0x518] sm:$0xff]  ;;  %v236_v11 = vld [vmem:[#allocation5 + $0x590] sm:$0xff] }
  0x68   :  { %1573 = vmatpush3.msra.mxu1 %v155_v12  ;;  %1539 = vmatprep.subr.mxu0 %v138_v13  ;;  %v496_v12 = vrot.slane %v54_v0, %v1994_v51  ;;  %v188_v13 = vld [vmem:[#allocation5 + $0x410] sm:$0xff] }
  0x69   :  { %1574 = vmatprep.subr.mxu1 %v170_v14  ;;  %1540 = vmatpush3.msra.mxu0 %v122_v16  ;;  %v220_v14 = vld [vmem:[#allocation5 + $0x510] sm:$0xff]  ;;  %v235_v16 = vld [vmem:[#allocation5 + $0x588] sm:$0xff] }
  0x6a   :  { %785 = vmatprep.mubr.f32.mxu0 %v487_v15  ;;  %1575 = vmatpush3.msra.mxu1 %v154_v17  ;;  %v203_v15 = vld [vmem:[#allocation5 + $0x488] sm:$0xff]  ;;  %v503_v17 = vrot.slane %v489_v7, %v1994_v51  ;;  %v304_v0 = vld [vmem:[#allocation5 + $0x7b0] sm:$0xff] }
  0x6b   :  { %786 = vmatmul.mubr.f32.vlgmr.msra.gmra.mxu0 %v479_v5  ;;  %855 = vmatprep.mubr.f32.mxu1 %v488_v18  ;;  %v205_v5 = vld [vmem:[#allocation5 + $0x498] sm:$0xff]  ;;  %v187_v18 = vld [vmem:[#allocation5 + $0x408] sm:$0xff] }
  0x6c   :  { %1579 = vmatprep.subr.mxu0 %v217_v19  ;;  %1614 = vmatprep.subr.mxu1 %v249_v20  ;;  %v219_v19 = vld [vmem:[#allocation5 + $0x508] sm:$0xff]  ;;  %v202_v20 = vld [vmem:[#allocation5 + $0x480] sm:$0xff] }
  0x6d   :  { %856 = vmatmul.mubr.f32.vlgmr.msra.gmra.mxu1 %v486_v10  ;;  %1580 = vmatpush3.msra.mxu0 %v201_v21  ;;  %v204_v10 = vld [vmem:[#allocation5 + $0x490] sm:$0xff]  ;;  %v234_v21 = vld [vmem:[#allocation5 + $0x580] sm:$0xff]  ;;  %v55_v7 = vld [vmem:[#allocation2 + $0x18] sm:$0xff] }
  0x6e   :  { %1615 = vmatpush3.msra.mxu1 %v233_v22  ;;  %1581 = vmatprep.subr.mxu0 %v216_v23  ;;  %v504_v22 = vcombine.high %v496_v12, %v496_v12  ;;  %v186_v23 = vld [vmem:[#allocation5 + $0x400] sm:$0xff] }
  0x6f   :  { %1616 = vmatprep.subr.mxu1 %v248_v24  ;;  %1582 = vmatpush3.msra.mxu0 %v200_v25  ;;  %v218_v24 = vld [vmem:[#allocation5 + $0x500] sm:$0xff]  ;;  %v505_v25 = vcombine.high %v503_v17, %v503_v17 }
  0x70   :  { %1617 = vmatpush3.msra.mxu1 %v232_v26  ;;  %1583 = vmatprep.subr.mxu0 %v215_v27  ;;  %v281_v26 = vld [vmem:[#allocation5 + $0x6f8] sm:$0xff] }
  0x71   :  { %1618 = vmatprep.subr.mxu1 %v247_v28  ;;  %1584 = vmatpush3.msra.mxu0 %v199_v29  ;;  %v313_v27 = vld [vmem:[#allocation5 + $0x7f8] sm:$0xff] }
  0x72   :  { %1619 = vmatpush3.msra.mxu1 %v231_v30  ;;  %1585 = vmatprep.subr.mxu0 %v214_v31  ;;  %v265_v28 = vld [vmem:[#allocation5 + $0x678] sm:$0xff]  ;;  %v280_v30 = vld [vmem:[#allocation5 + $0x6f0] sm:$0xff] }
  0x73   :  { %1620 = vmatprep.subr.mxu1 %v246_v32  ;;  %1586 = vmatpush3.msra.mxu0 %v198_v33  ;;  %v297_v29 = vld [vmem:[#allocation5 + $0x778] sm:$0xff]  ;;  %v312_v31 = vld [vmem:[#allocation5 + $0x7f0] sm:$0xff] }
  0x74   :  { %1621 = vmatpush3.msra.mxu1 %v230_v34  ;;  %1587 = vmatprep.subr.mxu0 %v213_v35  ;;  %v264_v32 = vld [vmem:[#allocation5 + $0x670] sm:$0xff]  ;;  %v279_v34 = vld [vmem:[#allocation5 + $0x6e8] sm:$0xff] }
  0x75   :  { %1622 = vmatprep.subr.mxu1 %v245_v36  ;;  %1588 = vmatpush3.msra.mxu0 %v197_v37  ;;  %v296_v33 = vld [vmem:[#allocation5 + $0x770] sm:$0xff]  ;;  %v311_v35 = vld [vmem:[#allocation5 + $0x7e8] sm:$0xff] }
  0x76   :  { %1623 = vmatpush3.msra.mxu1 %v229_v38  ;;  %1589 = vmatprep.subr.mxu0 %v212_v39  ;;  %v263_v36 = vld [vmem:[#allocation5 + $0x668] sm:$0xff]  ;;  %v278_v38 = vld [vmem:[#allocation5 + $0x6e0] sm:$0xff] }
  0x77   :  { %1624 = vmatprep.subr.mxu1 %v244_v40  ;;  %1590 = vmatpush3.msra.mxu0 %v196_v41  ;;  %v295_v37 = vld [vmem:[#allocation5 + $0x768] sm:$0xff]  ;;  %v310_v39 = vld [vmem:[#allocation5 + $0x7e0] sm:$0xff] }
  0x78   :  { %1625 = vmatpush3.msra.mxu1 %v228_v42  ;;  %1591 = vmatprep.subr.mxu0 %v211_v43  ;;  %v262_v40 = vld [vmem:[#allocation5 + $0x660] sm:$0xff]  ;;  %v277_v42 = vld [vmem:[#allocation5 + $0x6d8] sm:$0xff] }
  0x79   :  { %1626 = vmatprep.subr.mxu1 %v243_v44  ;;  %1592 = vmatpush3.msra.mxu0 %v195_v45  ;;  %v294_v41 = vld [vmem:[#allocation5 + $0x760] sm:$0xff]  ;;  %v309_v43 = vld [vmem:[#allocation5 + $0x7d8] sm:$0xff] }
  0x7a   :  { %1627 = vmatpush3.msra.mxu1 %v227_v46  ;;  %1593 = vmatprep.subr.mxu0 %v210_v47  ;;  %v261_v44 = vld [vmem:[#allocation5 + $0x658] sm:$0xff]  ;;  %v276_v46 = vld [vmem:[#allocation5 + $0x6d0] sm:$0xff] }
  0x7b   :  { %1628 = vmatprep.subr.mxu1 %v242_v48  ;;  %1594 = vmatpush3.msra.mxu0 %v194_v49  ;;  %v293_v45 = vld [vmem:[#allocation5 + $0x758] sm:$0xff]  ;;  %v308_v47 = vld [vmem:[#allocation5 + $0x7d0] sm:$0xff] }
  0x7c   :  { %1629 = vmatpush3.msra.mxu1 %v226_v50  ;;  %1595 = vmatprep.subr.mxu0 %v209_v52  ;;  %v260_v48 = vld [vmem:[#allocation5 + $0x650] sm:$0xff]  ;;  %v275_v50 = vld [vmem:[#allocation5 + $0x6c8] sm:$0xff] }
  0x7d   :  { %1630 = vmatprep.subr.mxu1 %v241_v53  ;;  %1596 = vmatpush3.msra.mxu0 %v193_v54  ;;  %v292_v49 = vld [vmem:[#allocation5 + $0x750] sm:$0xff]  ;;  %v307_v52 = vld [vmem:[#allocation5 + $0x7c8] sm:$0xff] }
  0x7e   :  { %1631 = vmatpush3.msra.mxu1 %v225_v55  ;;  %1597 = vmatprep.subr.mxu0 %v208_v56  ;;  %v259_v53 = vld [vmem:[#allocation5 + $0x648] sm:$0xff]  ;;  %v274_v55 = vld [vmem:[#allocation5 + $0x6c0] sm:$0xff] }
  0x7f   :  { %1632 = vmatprep.subr.mxu1 %v240_v57  ;;  %1598 = vmatpush3.msra.mxu0 %v192_v58  ;;  %v291_v54 = vld [vmem:[#allocation5 + $0x748] sm:$0xff]  ;;  %v306_v56 = vld [vmem:[#allocation5 + $0x7c0] sm:$0xff] }
  0x80   :  { %1633 = vmatpush3.msra.mxu1 %v224_v59  ;;  %1599 = vmatprep.subr.mxu0 %v207_v60  ;;  %v258_v57 = vld [vmem:[#allocation5 + $0x640] sm:$0xff]  ;;  %v273_v59 = vld [vmem:[#allocation5 + $0x6b8] sm:$0xff] }
  0x81   :  { %1634 = vmatprep.subr.mxu1 %v239_v61  ;;  %1600 = vmatpush3.msra.mxu0 %v191_v62  ;;  %v290_v58 = vld [vmem:[#allocation5 + $0x740] sm:$0xff]  ;;  %v305_v60 = vld [vmem:[#allocation5 + $0x7b8] sm:$0xff] }
  0x82   :  { %1635 = vmatpush3.msra.mxu1 %v223_v63  ;;  %1601 = vmatprep.subr.mxu0 %v206_v1  ;;  %v257_v61 = vld [vmem:[#allocation5 + $0x638] sm:$0xff]  ;;  %v272_v63 = vld [vmem:[#allocation5 + $0x6b0] sm:$0xff] }
  0x83   :  { %1636 = vmatprep.subr.mxu1 %v238_v2  ;;  %1602 = vmatpush3.msra.mxu0 %v190_v3  ;;  %v289_v62 = vld [vmem:[#allocation5 + $0x738] sm:$0xff]  ;;  %v256_v1 = vld [vmem:[#allocation5 + $0x630] sm:$0xff]  ;;  %v271_v3 = vld [vmem:[#allocation5 + $0x6a8] sm:$0xff] }
  0x84   :  { %1637 = vmatpush3.msra.mxu1 %v222_v4  ;;  %1603 = vmatprep.subr.mxu0 %v205_v5  ;;  %v288_v2 = vld [vmem:[#allocation5 + $0x730] sm:$0xff]  ;;  %v303_v4 = vld [vmem:[#allocation5 + $0x7a8] sm:$0xff] }
  0x85   :  { %1638 = vmatprep.subr.mxu1 %v237_v6  ;;  %1604 = vmatpush3.msra.mxu0 %v189_v8  ;;  %v255_v5 = vld [vmem:[#allocation5 + $0x628] sm:$0xff]  ;;  %v270_v8 = vld [vmem:[#allocation5 + $0x6a0] sm:$0xff] }
  0x86   :  { %1639 = vmatpush3.msra.mxu1 %v221_v9  ;;  %1605 = vmatprep.subr.mxu0 %v204_v10  ;;  %v287_v6 = vld [vmem:[#allocation5 + $0x728] sm:$0xff]  ;;  %v302_v9 = vld [vmem:[#allocation5 + $0x7a0] sm:$0xff] }
  0x87   :  { %1640 = vmatprep.subr.mxu1 %v236_v11  ;;  %1606 = vmatpush3.msra.mxu0 %v188_v13  ;;  %v254_v10 = vld [vmem:[#allocation5 + $0x620] sm:$0xff]  ;;  %v301_v13 = vld [vmem:[#allocation5 + $0x798] sm:$0xff] }
  0x88   :  { %1641 = vmatpush3.msra.mxu1 %v220_v14  ;;  %1607 = vmatprep.subr.mxu0 %v203_v15  ;;  %v286_v11 = vld [vmem:[#allocation5 + $0x720] sm:$0xff]  ;;  %v506_v14 = vcombine.high %v55_v7, %v55_v7  ;;  %v253_v15 = vld [vmem:[#allocation5 + $0x618] sm:$0xff] }
  0x89   :  { %1642 = vmatprep.subr.mxu1 %v235_v16  ;;  %1608 = vmatpush3.msra.mxu0 %v187_v18  ;;  %v285_v16 = vld [vmem:[#allocation5 + $0x718] sm:$0xff]  ;;  %v300_v18 = vld [vmem:[#allocation5 + $0x790] sm:$0xff] }
  0x8a   :  { %1643 = vmatpush3.msra.mxu1 %v219_v19  ;;  %1609 = vmatprep.subr.mxu0 %v202_v20  ;;  %v513_v19 = vrot.slane %v55_v7, %v1994_v51  ;;  %v252_v20 = vld [vmem:[#allocation5 + $0x610] sm:$0xff] }
  0x8b   :  { %1644 = vmatprep.subr.mxu1 %v234_v21  ;;  %1610 = vmatpush3.msra.mxu0 %v186_v23  ;;  %v284_v21 = vld [vmem:[#allocation5 + $0x710] sm:$0xff]  ;;  %v299_v23 = vld [vmem:[#allocation5 + $0x788] sm:$0xff] }
  0x8c   :  { %925 = vmatprep.mubr.f32.mxu0 %v504_v22  ;;  %1645 = vmatpush3.msra.mxu1 %v218_v24  ;;  %v267_v22 = vld [vmem:[#allocation5 + $0x688] sm:$0xff]  ;;  %v520_v24 = vrot.slane %v506_v14, %v1994_v51  ;;  %v368_v7 = vld [vmem:[#allocation5 + $0x9b0] sm:$0xff] }
  0x8d   :  { %926 = vmatmul.mubr.f32.vlgmr.msra.gmra.mxu0 %v496_v12  ;;  %995 = vmatprep.mubr.f32.mxu1 %v505_v25  ;;  %v269_v12 = vld [vmem:[#allocation5 + $0x698] sm:$0xff]  ;;  %v251_v25 = vld [vmem:[#allocation5 + $0x608] sm:$0xff]  ;;  %v56_v14 = vld [vmem:[#allocation2 + $0x20] sm:$0xff] }
  0x8e   :  { %1649 = vmatprep.subr.mxu0 %v281_v26  ;;  %1684 = vmatprep.subr.mxu1 %v313_v27  ;;  %v283_v26 = vld [vmem:[#allocation5 + $0x708] sm:$0xff]  ;;  %v266_v27 = vld [vmem:[#allocation5 + $0x680] sm:$0xff] }
  0x8f   :  { %996 = vmatmul.mubr.f32.vlgmr.msra.gmra.mxu1 %v503_v17  ;;  %1650 = vmatpush3.msra.mxu0 %v265_v28  ;;  %v268_v17 = vld [vmem:[#allocation5 + $0x690] sm:$0xff]  ;;  %v298_v28 = vld [vmem:[#allocation5 + $0x780] sm:$0xff] }
  0x90   :  { %1685 = vmatpush3.msra.mxu1 %v297_v29  ;;  %1651 = vmatprep.subr.mxu0 %v280_v30  ;;  %v521_v29 = vcombine.high %v513_v19, %v513_v19  ;;  %v250_v30 = vld [vmem:[#allocation5 + $0x600] sm:$0xff] }
  0x91   :  { %1686 = vmatprep.subr.mxu1 %v312_v31  ;;  %1652 = vmatpush3.msra.mxu0 %v264_v32  ;;  %v282_v31 = vld [vmem:[#allocation5 + $0x700] sm:$0xff]  ;;  %v522_v32 = vcombine.high %v520_v24, %v520_v24 }
  0x92   :  { %1687 = vmatpush3.msra.mxu1 %v296_v33  ;;  %1653 = vmatprep.subr.mxu0 %v279_v34  ;;  %v345_v33 = vld [vmem:[#allocation5 + $0x8f8] sm:$0xff] }
  0x93   :  { %1688 = vmatprep.subr.mxu1 %v311_v35  ;;  %1654 = vmatpush3.msra.mxu0 %v263_v36  ;;  %v377_v34 = vld [vmem:[#allocation5 + $0x9f8] sm:$0xff] }
  0x94   :  { %1689 = vmatpush3.msra.mxu1 %v295_v37  ;;  %1655 = vmatprep.subr.mxu0 %v278_v38  ;;  %v329_v35 = vld [vmem:[#allocation5 + $0x878] sm:$0xff]  ;;  %v344_v37 = vld [vmem:[#allocation5 + $0x8f0] sm:$0xff] }
  0x95   :  { %1690 = vmatprep.subr.mxu1 %v310_v39  ;;  %1656 = vmatpush3.msra.mxu0 %v262_v40  ;;  %v361_v36 = vld [vmem:[#allocation5 + $0x978] sm:$0xff]  ;;  %v376_v38 = vld [vmem:[#allocation5 + $0x9f0] sm:$0xff] }
  0x96   :  { %1691 = vmatpush3.msra.mxu1 %v294_v41  ;;  %1657 = vmatprep.subr.mxu0 %v277_v42  ;;  %v328_v39 = vld [vmem:[#allocation5 + $0x870] sm:$0xff]  ;;  %v343_v41 = vld [vmem:[#allocation5 + $0x8e8] sm:$0xff] }
  0x97   :  { %1692 = vmatprep.subr.mxu1 %v309_v43  ;;  %1658 = vmatpush3.msra.mxu0 %v261_v44  ;;  %v360_v40 = vld [vmem:[#allocation5 + $0x970] sm:$0xff]  ;;  %v375_v42 = vld [vmem:[#allocation5 + $0x9e8] sm:$0xff] }
  0x98   :  { %1693 = vmatpush3.msra.mxu1 %v293_v45  ;;  %1659 = vmatprep.subr.mxu0 %v276_v46  ;;  %v327_v43 = vld [vmem:[#allocation5 + $0x868] sm:$0xff]  ;;  %v342_v45 = vld [vmem:[#allocation5 + $0x8e0] sm:$0xff] }
  0x99   :  { %1694 = vmatprep.subr.mxu1 %v308_v47  ;;  %1660 = vmatpush3.msra.mxu0 %v260_v48  ;;  %v359_v44 = vld [vmem:[#allocation5 + $0x968] sm:$0xff]  ;;  %v374_v46 = vld [vmem:[#allocation5 + $0x9e0] sm:$0xff] }
  0x9a   :  { %1695 = vmatpush3.msra.mxu1 %v292_v49  ;;  %1661 = vmatprep.subr.mxu0 %v275_v50  ;;  %v326_v47 = vld [vmem:[#allocation5 + $0x860] sm:$0xff]  ;;  %v341_v49 = vld [vmem:[#allocation5 + $0x8d8] sm:$0xff] }
  0x9b   :  { %1696 = vmatprep.subr.mxu1 %v307_v52  ;;  %1662 = vmatpush3.msra.mxu0 %v259_v53  ;;  %v358_v48 = vld [vmem:[#allocation5 + $0x960] sm:$0xff]  ;;  %v373_v50 = vld [vmem:[#allocation5 + $0x9d8] sm:$0xff] }
  0x9c   :  { %1697 = vmatpush3.msra.mxu1 %v291_v54  ;;  %1663 = vmatprep.subr.mxu0 %v274_v55  ;;  %v325_v52 = vld [vmem:[#allocation5 + $0x858] sm:$0xff]  ;;  %v340_v54 = vld [vmem:[#allocation5 + $0x8d0] sm:$0xff] }
  0x9d   :  { %1698 = vmatprep.subr.mxu1 %v306_v56  ;;  %1664 = vmatpush3.msra.mxu0 %v258_v57  ;;  %v357_v53 = vld [vmem:[#allocation5 + $0x958] sm:$0xff]  ;;  %v372_v55 = vld [vmem:[#allocation5 + $0x9d0] sm:$0xff] }
  0x9e   :  { %1699 = vmatpush3.msra.mxu1 %v290_v58  ;;  %1665 = vmatprep.subr.mxu0 %v273_v59  ;;  %v324_v56 = vld [vmem:[#allocation5 + $0x850] sm:$0xff]  ;;  %v339_v58 = vld [vmem:[#allocation5 + $0x8c8] sm:$0xff] }
  0x9f   :  { %1700 = vmatprep.subr.mxu1 %v305_v60  ;;  %1666 = vmatpush3.msra.mxu0 %v257_v61  ;;  %v356_v57 = vld [vmem:[#allocation5 + $0x950] sm:$0xff]  ;;  %v371_v59 = vld [vmem:[#allocation5 + $0x9c8] sm:$0xff] }
  0xa0   :  { %1701 = vmatpush3.msra.mxu1 %v289_v62  ;;  %1667 = vmatprep.subr.mxu0 %v272_v63  ;;  %v323_v60 = vld [vmem:[#allocation5 + $0x848] sm:$0xff]  ;;  %v338_v62 = vld [vmem:[#allocation5 + $0x8c0] sm:$0xff] }
  0xa1   :  { %1702 = vmatprep.subr.mxu1 %v304_v0  ;;  %1668 = vmatpush3.msra.mxu0 %v256_v1  ;;  %v355_v61 = vld [vmem:[#allocation5 + $0x948] sm:$0xff]  ;;  %v370_v63 = vld [vmem:[#allocation5 + $0x9c0] sm:$0xff] }
  0xa2   :  { %1703 = vmatpush3.msra.mxu1 %v288_v2  ;;  %1669 = vmatprep.subr.mxu0 %v271_v3  ;;  %v322_v0 = vld [vmem:[#allocation5 + $0x840] sm:$0xff]  ;;  %v337_v2 = vld [vmem:[#allocation5 + $0x8b8] sm:$0xff] }
  0xa3   :  { %1704 = vmatprep.subr.mxu1 %v303_v4  ;;  %1670 = vmatpush3.msra.mxu0 %v255_v5  ;;  %v354_v1 = vld [vmem:[#allocation5 + $0x940] sm:$0xff]  ;;  %v369_v3 = vld [vmem:[#allocation5 + $0x9b8] sm:$0xff] }
  0xa4   :  { %1705 = vmatpush3.msra.mxu1 %v287_v6  ;;  %1671 = vmatprep.subr.mxu0 %v270_v8  ;;  %v321_v4 = vld [vmem:[#allocation5 + $0x838] sm:$0xff]  ;;  %v336_v6 = vld [vmem:[#allocation5 + $0x8b0] sm:$0xff] }
  0xa5   :  { %1706 = vmatprep.subr.mxu1 %v302_v9  ;;  %1672 = vmatpush3.msra.mxu0 %v254_v10  ;;  %v353_v5 = vld [vmem:[#allocation5 + $0x938] sm:$0xff]  ;;  %v320_v8 = vld [vmem:[#allocation5 + $0x830] sm:$0xff]  ;;  %v335_v10 = vld [vmem:[#allocation5 + $0x8a8] sm:$0xff] }
  0xa6   :  { %1707 = vmatpush3.msra.mxu1 %v286_v11  ;;  %1673 = vmatprep.subr.mxu0 %v269_v12  ;;  %v352_v9 = vld [vmem:[#allocation5 + $0x930] sm:$0xff]  ;;  %v367_v11 = vld [vmem:[#allocation5 + $0x9a8] sm:$0xff] }
  0xa7   :  { %1708 = vmatprep.subr.mxu1 %v301_v13  ;;  %1674 = vmatpush3.msra.mxu0 %v253_v15  ;;  %v319_v12 = vld [vmem:[#allocation5 + $0x828] sm:$0xff]  ;;  %v334_v15 = vld [vmem:[#allocation5 + $0x8a0] sm:$0xff] }
  0xa8   :  { %1709 = vmatpush3.msra.mxu1 %v285_v16  ;;  %1675 = vmatprep.subr.mxu0 %v268_v17  ;;  %v351_v13 = vld [vmem:[#allocation5 + $0x928] sm:$0xff]  ;;  %v366_v16 = vld [vmem:[#allocation5 + $0x9a0] sm:$0xff] }
  0xa9   :  { %1710 = vmatprep.subr.mxu1 %v300_v18  ;;  %1676 = vmatpush3.msra.mxu0 %v252_v20  ;;  %v318_v17 = vld [vmem:[#allocation5 + $0x820] sm:$0xff]  ;;  %v365_v20 = vld [vmem:[#allocation5 + $0x998] sm:$0xff] }
  0xaa   :  { %1711 = vmatpush3.msra.mxu1 %v284_v21  ;;  %1677 = vmatprep.subr.mxu0 %v267_v22  ;;  %v350_v18 = vld [vmem:[#allocation5 + $0x920] sm:$0xff]  ;;  %v523_v21 = vcombine.high %v56_v14, %v56_v14  ;;  %v317_v22 = vld [vmem:[#allocation5 + $0x818] sm:$0xff] }
  0xab   :  { %1712 = vmatprep.subr.mxu1 %v299_v23  ;;  %1678 = vmatpush3.msra.mxu0 %v251_v25  ;;  %v349_v23 = vld [vmem:[#allocation5 + $0x918] sm:$0xff]  ;;  %v364_v25 = vld [vmem:[#allocation5 + $0x990] sm:$0xff] }
  0xac   :  { %1713 = vmatpush3.msra.mxu1 %v283_v26  ;;  %1679 = vmatprep.subr.mxu0 %v266_v27  ;;  %v530_v26 = vrot.slane %v56_v14, %v1994_v51  ;;  %v316_v27 = vld [vmem:[#allocation5 + $0x810] sm:$0xff] }
  0xad   :  { %1714 = vmatprep.subr.mxu1 %v298_v28  ;;  %1680 = vmatpush3.msra.mxu0 %v250_v30  ;;  %v348_v28 = vld [vmem:[#allocation5 + $0x910] sm:$0xff]  ;;  %v363_v30 = vld [vmem:[#allocation5 + $0x988] sm:$0xff] }
  0xae   :  { %1065 = vmatprep.mubr.f32.mxu0 %v521_v29  ;;  %1715 = vmatpush3.msra.mxu1 %v282_v31  ;;  %v331_v29 = vld [vmem:[#allocation5 + $0x888] sm:$0xff]  ;;  %v537_v31 = vrot.slane %v523_v21, %v1994_v51  ;;  %v432_v14 = vld [vmem:[#allocation5 + $0xbb0] sm:$0xff] }
  0xaf   :  { %1066 = vmatmul.mubr.f32.vlgmr.msra.gmra.mxu0 %v513_v19  ;;  %1135 = vmatprep.mubr.f32.mxu1 %v522_v32  ;;  %v333_v19 = vld [vmem:[#allocation5 + $0x898] sm:$0xff]  ;;  %v315_v32 = vld [vmem:[#allocation5 + $0x808] sm:$0xff] }
  0xb0   :  { %1719 = vmatprep.subr.mxu0 %v345_v33  ;;  %1754 = vmatprep.subr.mxu1 %v377_v34  ;;  %v347_v33 = vld [vmem:[#allocation5 + $0x908] sm:$0xff]  ;;  %v330_v34 = vld [vmem:[#allocation5 + $0x880] sm:$0xff] }
  0xb1   :  { %1136 = vmatmul.mubr.f32.vlgmr.msra.gmra.mxu1 %v520_v24  ;;  %1720 = vmatpush3.msra.mxu0 %v329_v35  ;;  %v332_v24 = vld [vmem:[#allocation5 + $0x890] sm:$0xff]  ;;  %v362_v35 = vld [vmem:[#allocation5 + $0x980] sm:$0xff]  ;;  %v415_v21 = vld [vmem:[#allocation5 + $0xb28] sm:$0xff] }
  0xb2   :  { %1755 = vmatpush3.msra.mxu1 %v361_v36  ;;  %1721 = vmatprep.subr.mxu0 %v344_v37  ;;  %v538_v36 = vcombine.high %v530_v26, %v530_v26  ;;  %v314_v37 = vld [vmem:[#allocation5 + $0x800] sm:$0xff] }
  0xb3   :  { %1756 = vmatprep.subr.mxu1 %v376_v38  ;;  %1722 = vmatpush3.msra.mxu0 %v328_v39  ;;  %v346_v38 = vld [vmem:[#allocation5 + $0x900] sm:$0xff]  ;;  %v539_v39 = vcombine.high %v537_v31, %v537_v31 }
  0xb4   :  { %1757 = vmatpush3.msra.mxu1 %v360_v40  ;;  %1723 = vmatprep.subr.mxu0 %v343_v41  ;;  %v409_v40 = vld [vmem:[#allocation5 + $0xaf8] sm:$0xff] }
  0xb5   :  { %1758 = vmatprep.subr.mxu1 %v375_v42  ;;  %1724 = vmatpush3.msra.mxu0 %v327_v43  ;;  %v441_v41 = vld [vmem:[#allocation5 + $0xbf8] sm:$0xff] }
  0xb6   :  { %1759 = vmatpush3.msra.mxu1 %v359_v44  ;;  %1725 = vmatprep.subr.mxu0 %v342_v45  ;;  %v393_v42 = vld [vmem:[#allocation5 + $0xa78] sm:$0xff]  ;;  %v408_v44 = vld [vmem:[#allocation5 + $0xaf0] sm:$0xff] }
  0xb7   :  { %1760 = vmatprep.subr.mxu1 %v374_v46  ;;  %1726 = vmatpush3.msra.mxu0 %v326_v47  ;;  %v425_v43 = vld [vmem:[#allocation5 + $0xb78] sm:$0xff]  ;;  %v440_v45 = vld [vmem:[#allocation5 + $0xbf0] sm:$0xff] }
  0xb8   :  { %1761 = vmatpush3.msra.mxu1 %v358_v48  ;;  %1727 = vmatprep.subr.mxu0 %v341_v49  ;;  %v392_v46 = vld [vmem:[#allocation5 + $0xa70] sm:$0xff]  ;;  %v407_v48 = vld [vmem:[#allocation5 + $0xae8] sm:$0xff] }
  0xb9   :  { %1762 = vmatprep.subr.mxu1 %v373_v50  ;;  %1728 = vmatpush3.msra.mxu0 %v325_v52  ;;  %v424_v47 = vld [vmem:[#allocation5 + $0xb70] sm:$0xff]  ;;  %v439_v49 = vld [vmem:[#allocation5 + $0xbe8] sm:$0xff] }
  0xba   :  { %1763 = vmatpush3.msra.mxu1 %v357_v53  ;;  %1729 = vmatprep.subr.mxu0 %v340_v54  ;;  %v391_v50 = vld [vmem:[#allocation5 + $0xa68] sm:$0xff]  ;;  %v406_v53 = vld [vmem:[#allocation5 + $0xae0] sm:$0xff] }
  0xbb   :  { %1764 = vmatprep.subr.mxu1 %v372_v55  ;;  %1730 = vmatpush3.msra.mxu0 %v324_v56  ;;  %v423_v52 = vld [vmem:[#allocation5 + $0xb68] sm:$0xff]  ;;  %v438_v54 = vld [vmem:[#allocation5 + $0xbe0] sm:$0xff] }
  0xbc   :  { %1765 = vmatpush3.msra.mxu1 %v356_v57  ;;  %1731 = vmatprep.subr.mxu0 %v339_v58  ;;  %v390_v55 = vld [vmem:[#allocation5 + $0xa60] sm:$0xff]  ;;  %v405_v57 = vld [vmem:[#allocation5 + $0xad8] sm:$0xff] }
  0xbd   :  { %1766 = vmatprep.subr.mxu1 %v371_v59  ;;  %1732 = vmatpush3.msra.mxu0 %v323_v60  ;;  %v422_v56 = vld [vmem:[#allocation5 + $0xb60] sm:$0xff]  ;;  %v437_v58 = vld [vmem:[#allocation5 + $0xbd8] sm:$0xff] }
  0xbe   :  { %1767 = vmatpush3.msra.mxu1 %v355_v61  ;;  %1733 = vmatprep.subr.mxu0 %v338_v62  ;;  %v389_v59 = vld [vmem:[#allocation5 + $0xa58] sm:$0xff]  ;;  %v404_v61 = vld [vmem:[#allocation5 + $0xad0] sm:$0xff] }
  0xbf   :  { %1768 = vmatprep.subr.mxu1 %v370_v63  ;;  %1734 = vmatpush3.msra.mxu0 %v322_v0  ;;  %v421_v60 = vld [vmem:[#allocation5 + $0xb58] sm:$0xff]  ;;  %v436_v62 = vld [vmem:[#allocation5 + $0xbd0] sm:$0xff] }
  0xc0   :  { %1769 = vmatpush3.msra.mxu1 %v354_v1  ;;  %1735 = vmatprep.subr.mxu0 %v337_v2  ;;  %v388_v63 = vld [vmem:[#allocation5 + $0xa50] sm:$0xff]  ;;  %v403_v1 = vld [vmem:[#allocation5 + $0xac8] sm:$0xff] }
  0xc1   :  { %1770 = vmatprep.subr.mxu1 %v369_v3  ;;  %1736 = vmatpush3.msra.mxu0 %v321_v4  ;;  %v420_v0 = vld [vmem:[#allocation5 + $0xb50] sm:$0xff]  ;;  %v435_v2 = vld [vmem:[#allocation5 + $0xbc8] sm:$0xff] }
  0xc2   :  { %1771 = vmatpush3.msra.mxu1 %v353_v5  ;;  %1737 = vmatprep.subr.mxu0 %v336_v6  ;;  %v387_v3 = vld [vmem:[#allocation5 + $0xa48] sm:$0xff]  ;;  %v402_v5 = vld [vmem:[#allocation5 + $0xac0] sm:$0xff] }
  0xc3   :  { %1772 = vmatprep.subr.mxu1 %v368_v7  ;;  %1738 = vmatpush3.msra.mxu0 %v320_v8  ;;  %v419_v4 = vld [vmem:[#allocation5 + $0xb48] sm:$0xff]  ;;  %v434_v6 = vld [vmem:[#allocation5 + $0xbc0] sm:$0xff] }
  0xc4   :  { %1773 = vmatpush3.msra.mxu1 %v352_v9  ;;  %1739 = vmatprep.subr.mxu0 %v335_v10  ;;  %v386_v7 = vld [vmem:[#allocation5 + $0xa40] sm:$0xff]  ;;  %v401_v9 = vld [vmem:[#allocation5 + $0xab8] sm:$0xff] }
  0xc5   :  { %1774 = vmatprep.subr.mxu1 %v367_v11  ;;  %1740 = vmatpush3.msra.mxu0 %v319_v12  ;;  %v418_v8 = vld [vmem:[#allocation5 + $0xb40] sm:$0xff]  ;;  %v433_v10 = vld [vmem:[#allocation5 + $0xbb8] sm:$0xff] }
  0xc6   :  { %1775 = vmatpush3.msra.mxu1 %v351_v13  ;;  %1741 = vmatprep.subr.mxu0 %v334_v15  ;;  %v385_v11 = vld [vmem:[#allocation5 + $0xa38] sm:$0xff]  ;;  %v400_v13 = vld [vmem:[#allocation5 + $0xab0] sm:$0xff] }
  0xc7   :  { %1776 = vmatprep.subr.mxu1 %v366_v16  ;;  %1742 = vmatpush3.msra.mxu0 %v318_v17  ;;  %v417_v12 = vld [vmem:[#allocation5 + $0xb38] sm:$0xff]  ;;  %v384_v15 = vld [vmem:[#allocation5 + $0xa30] sm:$0xff]  ;;  %v399_v17 = vld [vmem:[#allocation5 + $0xaa8] sm:$0xff] }
  0xc8   :  { %1777 = vmatpush3.msra.mxu1 %v350_v18  ;;  %1743 = vmatprep.subr.mxu0 %v333_v19  ;;  %v416_v16 = vld [vmem:[#allocation5 + $0xb30] sm:$0xff]  ;;  %v431_v18 = vld [vmem:[#allocation5 + $0xba8] sm:$0xff]  ;;  %v57_v19 = vld [vmem:[#allocation2 + $0x28] sm:$0xff] }
  0xc9   :  { %1778 = vmatprep.subr.mxu1 %v365_v20  ;;  %1744 = vmatpush3.msra.mxu0 %v317_v22  ;;  %v383_v20 = vld [vmem:[#allocation5 + $0xa28] sm:$0xff]  ;;  %v398_v22 = vld [vmem:[#allocation5 + $0xaa0] sm:$0xff] }
  0xca   :  { %1779 = vmatpush3.msra.mxu1 %v349_v23  ;;  %1745 = vmatprep.subr.mxu0 %v332_v24  ;;  %v430_v23 = vld [vmem:[#allocation5 + $0xba0] sm:$0xff] }
  0xcb   :  { %1780 = vmatprep.subr.mxu1 %v364_v25  ;;  %1746 = vmatpush3.msra.mxu0 %v316_v27  ;;  %v382_v24 = vld [vmem:[#allocation5 + $0xa20] sm:$0xff]  ;;  %v397_v27 = vld [vmem:[#allocation5 + $0xa98] sm:$0xff] }
  0xcc   :  { %1781 = vmatpush3.msra.mxu1 %v348_v28  ;;  %1747 = vmatprep.subr.mxu0 %v331_v29  ;;  %v414_v25 = vld [vmem:[#allocation5 + $0xb20] sm:$0xff]  ;;  %v429_v28 = vld [vmem:[#allocation5 + $0xb98] sm:$0xff] }
  0xcd   :  { %1782 = vmatprep.subr.mxu1 %v363_v30  ;;  %1748 = vmatpush3.msra.mxu0 %v315_v32  ;;  %v381_v29 = vld [vmem:[#allocation5 + $0xa18] sm:$0xff]  ;;  %v428_v32 = vld [vmem:[#allocation5 + $0xb90] sm:$0xff] }
  0xce   :  { %1783 = vmatpush3.msra.mxu1 %v347_v33  ;;  %1749 = vmatprep.subr.mxu0 %v330_v34  ;;  %v413_v30 = vld [vmem:[#allocation5 + $0xb18] sm:$0xff]  ;;  %v547_v33 = vrot.slane %v57_v19, %v1994_v51  ;;  %v380_v34 = vld [vmem:[#allocation5 + $0xa10] sm:$0xff] }
  0xcf   :  { %1784 = vmatprep.subr.mxu1 %v362_v35  ;;  %1750 = vmatpush3.msra.mxu0 %v314_v37  ;;  %v412_v35 = vld [vmem:[#allocation5 + $0xb10] sm:$0xff]  ;;  %v395_v37 = vld [vmem:[#allocation5 + $0xa88] sm:$0xff] }
  0xd0   :  { %1205 = vmatprep.mubr.f32.mxu0 %v538_v36  ;;  %1785 = vmatpush3.msra.mxu1 %v346_v38  ;;  %v427_v38 = vld [vmem:[#allocation5 + $0xb88] sm:$0xff] }
  0xd1   :  { %1206 = vmatmul.mubr.f32.vlgmr.msra.gmra.mxu0 %v530_v26  ;;  %1275 = vmatprep.mubr.f32.mxu1 %v539_v39  ;;  %v540_v26 = vcombine.high %v57_v19, %v57_v19  ;;  %v379_v39 = vld [vmem:[#allocation5 + $0xa08] sm:$0xff] }
  0xd2   :  { %1789 = vmatprep.subr.mxu0 %v409_v40  ;;  %1824 = vmatprep.subr.mxu1 %v441_v41  ;;  %v411_v40 = vld [vmem:[#allocation5 + $0xb08] sm:$0xff]  ;;  %v394_v41 = vld [vmem:[#allocation5 + $0xa80] sm:$0xff] }
  0xd3   :  { %1276 = vmatmul.mubr.f32.vlgmr.msra.gmra.mxu1 %v537_v31  ;;  %1790 = vmatpush3.msra.mxu0 %v393_v42  ;;  %v396_v31 = vld [vmem:[#allocation5 + $0xa90] sm:$0xff]  ;;  %v554_v36 = vrot.slane %v540_v26, %v1994_v51  ;;  %v426_v42 = vld [vmem:[#allocation5 + $0xb80] sm:$0xff] }
  0xd4   :  { %1825 = vmatpush3.msra.mxu1 %v425_v43  ;;  %1791 = vmatprep.subr.mxu0 %v408_v44  ;;  %v555_v43 = vcombine.high %v547_v33, %v547_v33  ;;  %v378_v44 = vld [vmem:[#allocation5 + $0xa00] sm:$0xff] }
  0xd5   :  { %1826 = vmatprep.subr.mxu1 %v440_v45  ;;  %1792 = vmatpush3.msra.mxu0 %v392_v46  ;;  %v556_v45 = vcombine.high %v554_v36, %v554_v36  ;;  %v410_v51 = vld [vmem:[#allocation5 + $0xb00] sm:$0xff] }
  0xd6   :  { %1827 = vmatpush3.msra.mxu1 %v424_v47  ;;  %1793 = vmatprep.subr.mxu0 %v407_v48 }
  0xd7   :  { %1828 = vmatprep.subr.mxu1 %v439_v49  ;;  %1794 = vmatpush3.msra.mxu0 %v391_v50 }
  0xd8   :  { %1829 = vmatpush3.msra.mxu1 %v423_v52  ;;  %1795 = vmatprep.subr.mxu0 %v406_v53  ;;  %v1438_v52 = vld [vmem:[#allocation7] ss:$0 sm:$0xff] }
  0xd9   :  { %1830 = vmatprep.subr.mxu1 %v438_v54  ;;  %1796 = vmatpush3.msra.mxu0 %v390_v55 }
  0xda   :  { %1831 = vmatpush3.msra.mxu1 %v422_v56  ;;  %1797 = vmatprep.subr.mxu0 %v405_v57 }
  0xdb   :  { %1832 = vmatprep.subr.mxu1 %v437_v58  ;;  %1798 = vmatpush3.msra.mxu0 %v389_v59 }
  0xdc   :  { %1833 = vmatpush3.msra.mxu1 %v421_v60  ;;  %1799 = vmatprep.subr.mxu0 %v404_v61 }
  0xdd   :  { %1834 = vmatprep.subr.mxu1 %v436_v62  ;;  %1800 = vmatpush3.msra.mxu0 %v388_v63 }
  0xde   :  { %1835 = vmatpush3.msra.mxu1 %v420_v0  ;;  %1801 = vmatprep.subr.mxu0 %v403_v1 }
  0xdf   :  { %1836 = vmatprep.subr.mxu1 %v435_v2  ;;  %1802 = vmatpush3.msra.mxu0 %v387_v3 }
  0xe0   :  { %1837 = vmatpush3.msra.mxu1 %v419_v4  ;;  %1803 = vmatprep.subr.mxu0 %v402_v5 }
  0xe1   :  { %1838 = vmatprep.subr.mxu1 %v434_v6  ;;  %1804 = vmatpush3.msra.mxu0 %v386_v7 }
  0xe2   :  { %1839 = vmatpush3.msra.mxu1 %v418_v8  ;;  %1805 = vmatprep.subr.mxu0 %v401_v9 }
  0xe3   :  { %1840 = vmatprep.subr.mxu1 %v433_v10  ;;  %1806 = vmatpush3.msra.mxu0 %v385_v11 }
  0xe4   :  { %1841 = vmatpush3.msra.mxu1 %v417_v12  ;;  %1807 = vmatprep.subr.mxu0 %v400_v13 }
  0xe5   :  { %1842 = vmatprep.subr.mxu1 %v432_v14  ;;  %1808 = vmatpush3.msra.mxu0 %v384_v15 }
  0xe6   :  { %1843 = vmatpush3.msra.mxu1 %v416_v16  ;;  %1809 = vmatprep.subr.mxu0 %v399_v17 }
  0xe7   :  { %1844 = vmatprep.subr.mxu1 %v431_v18  ;;  %1810 = vmatpush3.msra.mxu0 %v383_v20 }
  0xe8   :  { %1845 = vmatpush3.msra.mxu1 %v415_v21  ;;  %1811 = vmatprep.subr.mxu0 %v398_v22 }
  0xe9   :  { %1846 = vmatprep.subr.mxu1 %v430_v23  ;;  %1812 = vmatpush3.msra.mxu0 %v382_v24 }
  0xea   :  { %1847 = vmatpush3.msra.mxu1 %v414_v25  ;;  %1813 = vmatprep.subr.mxu0 %v397_v27 }
  0xeb   :  { %1848 = vmatprep.subr.mxu1 %v429_v28  ;;  %1814 = vmatpush3.msra.mxu0 %v381_v29 }
  0xec   :  { %1849 = vmatpush3.msra.mxu1 %v413_v30  ;;  %1815 = vmatprep.subr.mxu0 %v396_v31 }
  0xed   :  { %1850 = vmatprep.subr.mxu1 %v428_v32  ;;  %1816 = vmatpush3.msra.mxu0 %v380_v34 }
  0xee   :  { %1851 = vmatpush3.msra.mxu1 %v412_v35  ;;  %1817 = vmatprep.subr.mxu0 %v395_v37 }
  0xef   :  { %1852 = vmatprep.subr.mxu1 %v427_v38  ;;  %1818 = vmatpush3.msra.mxu0 %v379_v39 }
  0xf0   :  { %1853 = vmatpush3.msra.mxu1 %v411_v40  ;;  %1819 = vmatprep.subr.mxu0 %v394_v41 }
  0xf1   :  { %1854 = vmatprep.subr.mxu1 %v426_v42  ;;  %1820 = vmatpush3.msra.mxu0 %v378_v44 }
  0xf2   :  { %1345 = vmatprep.mubr.f32.mxu0 %v555_v43  ;;  %1855 = vmatpush3.msra.mxu1 %v410_v51 }
  0xf3   :  { %1415 = vmatprep.mubr.f32.mxu1 %v556_v45  ;;  %1346 = vmatmul.mubr.f32.vlgmr.msra.gmra.mxu0 %v547_v33 }
  0xf4   :  { %1416 = vmatmul.mubr.f32.vlgmr.msra.gmra.mxu1 %v554_v36 }
 0x109   :  { %v1471_v46 = vpop.f32.mrf.mxu0 }
 0x10b   :  { %v1506_v47 = vpop.f32.mrf.mxu1  ;;  %v1472_v48 = vpop.f32.mrf.mxu0 }
 0x10c   :  { %v1473_v50 = vadd.f32 %v1472_v48, %v1471_v46 }
 0x10d   :  { %v1507_v53 = vpop.f32.mrf.mxu1 }
 0x10e   :  { %v648_v56 = vadd.f32 %v1473_v50, %v1438_v52  ;;  %v1508_v57 = vadd.f32 %v1507_v53, %v1506_v47 }
 0x110   :  { %v718_v61 = vadd.f32 %v1508_v57, %v648_v56 }
 0x12b   :  { %v1541_v49 = vpop.f32.mrf.mxu0 }
 0x12d   :  { %v1576_v54 = vpop.f32.mrf.mxu1  ;;  %v1542_v55 = vpop.f32.mrf.mxu0 }
 0x12e   :  { %v1543_v59 = vadd.f32 %v1542_v55, %v1541_v49 }
 0x12f   :  { %v1577_v60 = vpop.f32.mrf.mxu1 }
 0x130   :  { %v788_v0 = vadd.f32 %v1543_v59, %v718_v61  ;;  %v1578_v1 = vadd.f32 %v1577_v60, %v1576_v54 }
 0x132   :  { %v858_v5 = vadd.f32 %v1578_v1, %v788_v0 }
 0x14d   :  { %v1611_v58 = vpop.f32.mrf.mxu0 }
 0x14f   :  { %v1646_v62 = vpop.f32.mrf.mxu1  ;;  %v1612_v63 = vpop.f32.mrf.mxu0 }
 0x150   :  { %v1613_v3 = vadd.f32 %v1612_v63, %v1611_v58 }
 0x151   :  { %v1647_v4 = vpop.f32.mrf.mxu1 }
 0x152   :  { %v928_v8 = vadd.f32 %v1613_v3, %v858_v5  ;;  %v1648_v9 = vadd.f32 %v1647_v4, %v1646_v62 }
 0x154   :  { %v998_v13 = vadd.f32 %v1648_v9, %v928_v8 }
 0x16f   :  { %v1681_v2 = vpop.f32.mrf.mxu0 }
 0x171   :  { %v1716_v6 = vpop.f32.mrf.mxu1  ;;  %v1682_v7 = vpop.f32.mrf.mxu0 }
 0x172   :  { %v1683_v11 = vadd.f32 %v1682_v7, %v1681_v2 }
 0x173   :  { %v1717_v12 = vpop.f32.mrf.mxu1 }
 0x174   :  { %v1068_v16 = vadd.f32 %v1683_v11, %v998_v13  ;;  %v1718_v17 = vadd.f32 %v1717_v12, %v1716_v6 }
 0x176   :  { %v1138_v20 = vadd.f32 %v1718_v17, %v1068_v16 }
 0x191   :  { %v1751_v10 = vpop.f32.mrf.mxu0 }
 0x193   :  { %v1786_v14 = vpop.f32.mrf.mxu1  ;;  %v1752_v15 = vpop.f32.mrf.mxu0 }
 0x194   :  { %v1753_v18 = vadd.f32 %v1752_v15, %v1751_v10 }
 0x195   :  { %v1787_v19 = vpop.f32.mrf.mxu1 }
 0x196   :  { %v1208_v21 = vadd.f32 %v1753_v18, %v1138_v20  ;;  %v1788_v22 = vadd.f32 %v1787_v19, %v1786_v14 }
 0x198   :  { %v1278_v27 = vadd.f32 %v1788_v22, %v1208_v21 }
 0x1b3   :  { %v1821_v23 = vpop.f32.mrf.mxu0 }
 0x1b4   :  { %v1856_v24 = vpop.f32.mrf.mxu1 }
 0x1b5   :  { %v1822_v25 = vpop.f32.mrf.mxu0 }
 0x1b6   :  { %v1857_v26 = vpop.f32.mrf.mxu1  ;;  %v1823_v28 = vadd.f32 %v1822_v25, %v1821_v23 }
 0x1b7   :  { %v1858_v30 = vadd.f32 %v1857_v26, %v1856_v24 }
 0x1b8   :  { %v1348_v29 = vadd.f32 %v1823_v28, %v1278_v27 }
 0x1ba   :  { %v1418_v31 = vadd.f32 %v1858_v30, %v1348_v29 }
 0x1bc   :  { %1421 = vst [vmem:[#allocation8] sm:$0x3] %v1418_v31 }
 0x1bd   :  { %1943 = shalt.err (!%p1940_p5)
}
 0x1be   :  { %1431 = dma.vmem_to_hbm [thread:$0]  %s1429_s2, 32, %s2014_s3, [#allocation4]  }
 0x1bf   :  { %1956 = dma.done.wait [#allocation4], 32  }
 0x1c0   :  { %1957 = vsyncadd [#allocation4], 4294967264 }
 0x1c1   :  { %1435 = vsyncpa [#allocation3], 1 }
 0x1c2   :  { %1436 = vsyncpa [#allocation6], 1 }
 0x1c3   :  { %1437 = vsyncpa [#allocation4], 1 }

</bundles_post_ra>
